<compile_context>
chip_gen: v7x
topology: tpu7x:2x2x1
jax: 0.10.0
libtpu: 0.0.40
codegen_flags: <defaults>
</compile_context>

<pallas_src>
import functools

import jax
import jax.numpy as jnp
from jax.experimental import pallas as pl
from jax.experimental.pallas import tpu as pltpu


# ------------------------------- Helpers --------------------------------------

def _round_up(x, m):
    return ((x + m - 1) // m) * m


# ----------------------------- Fused Pallas kernel ---------------------------

def make_fused_autoencoder_kernel(layer_dims, n_encoder_layers, latent_pad):
    """Builds a kernel computing the full FC autoencoder for one batch tile.

    Ref order: x, w_0, ..., w_{L-1}, bias_slab, out, latent
      x:         (TM, to_linear)   bf16 activations (batch tile)
      w_i:       (in_i, out_i)     bf16 weight, stored transposed (VMEM-resident)
      bias_slab: (1, sum_i round_up(out_i, 128))  f32, 128-lane-aligned offsets
      out:       (TM, to_linear)   f32 reconstruction (lane-dense, 1024 wide)
      latent:    (TM, latent_pad)  f32 encoder output, zero padded to 128 lanes

    Every layer (including the final decoder layer) applies ReLU, matching
    activation='relu', activation_out='relu' in the PyTorch module.
    """
    n_layers = len(layer_dims)

    # Static, 128-lane-aligned offsets into the concatenated bias slab.
    bias_offsets = []
    off = 0
    for (_, out_d) in layer_dims:
        bias_offsets.append(off)
        off += _round_up(out_d, 128)

    def kernel(x_ref, *refs):
        w_refs = refs[:n_layers]
        bias_ref = refs[n_layers]
        out_ref = refs[n_layers + 1]
        latent_ref = refs[n_layers + 2]

        h_lo = x_ref[...]          # bf16 input to the first MXU pass
        h_f32 = None
        # Static Python loop over the fixed layer list -> fully unrolled;
        # intermediates never leave VMEM/vregs.
        for li, (_, out_d) in enumerate(layer_dims):
            acc = jnp.dot(h_lo, w_refs[li][...],
                          preferred_element_type=jnp.float32)
            b = bias_ref[:, bias_offsets[li]:bias_offsets[li] + out_d]   # (1, out_d) f32
            h_f32 = jnp.maximum(acc + b, 0.0)          # bias + ReLU in f32
            if li == n_encoder_layers - 1:
                tm = h_f32.shape[0]
                pad_cols = latent_pad - out_d
                if pad_cols > 0:
                    lat = jnp.concatenate(
                        [h_f32, jnp.zeros((tm, pad_cols), jnp.float32)],
                        axis=-1)
                else:
                    lat = h_f32
                latent_ref[...] = lat.astype(latent_ref.dtype)
            if li < n_layers - 1:
                h_lo = h_f32.astype(jnp.bfloat16)      # next MXU pass in bf16
        out_ref[...] = h_f32.astype(out_ref.dtype)

    return kernel


# --------------------------- Parameters (init) --------------------------------

def _init_linear(key, in_features, out_features):
    """Deterministic init mimicking PyTorch nn.Linear default (U(+-1/sqrt(in))).

    Sampled in PyTorch (out, in) convention for parity, then stored transposed
    as (in, out) and cast to bf16 so the forward pass never transposes and the
    weight DMA is half size.  Bias stays f32.
    """
    kw, kb = jax.random.split(key)
    bound = 1.0 / (in_features ** 0.5)
    w = jax.random.uniform(kw, (out_features, in_features), jnp.float32,
                           minval=-bound, maxval=bound)
    b = jax.random.uniform(kb, (out_features,), jnp.float32,
                           minval=-bound, maxval=bound)
    return w.T.astype(jnp.bfloat16), b  # (in, out) bf16, (out,) f32
    # TODO(synk): optional int8 weights + per-channel scales for v5e/v6e (no
    # int MXU path on v7x), if weight DMA ever dominates at scale.


def init_fc_autoencoder_params(key, input_width, input_height, input_channels,
                               hidden_sizes):
    to_linear = input_channels * input_width * input_height

    # Encoder: to_linear -> hidden_sizes[:-1] -> hidden_sizes[-1]
    enc_dims = [to_linear] + list(hidden_sizes)
    # Decoder: hidden_sizes[-1] -> reversed(hidden_sizes[:-1]) -> to_linear
    dec_hidden = list(hidden_sizes[:-1])
    dec_hidden.reverse()
    dec_dims = [hidden_sizes[-1]] + dec_hidden + [to_linear]

    params = {"encoder": [], "decoder": []}
    for i in range(len(enc_dims) - 1):
        key, sub = jax.random.split(key)
        params["encoder"].append(_init_linear(sub, enc_dims[i], enc_dims[i + 1]))
    for i in range(len(dec_dims) - 1):
        key, sub = jax.random.split(key)
        params["decoder"].append(_init_linear(sub, dec_dims[i], dec_dims[i + 1]))
    return params


# ------------------------------- Forward pass ---------------------------------

def fc_autoencoder_forward(params, x, *, input_width, input_height,
                           input_channels, tm_max=256):
    """x: (B, C, W, H) -> dict(output=(B,C,W,H) f32, latent=(B, hidden[-1]) f32)."""
    B = x.shape[0]
    to_linear = input_channels * input_width * input_height

    layers = list(params["encoder"]) + list(params["decoder"])
    n_enc = len(params["encoder"])
    layer_dims = [(w.shape[0], w.shape[1]) for (w, _) in layers]
    latent_dim = layer_dims[n_enc - 1][1]
    latent_pad = _round_up(latent_dim, 128)

    # Activations go to the MXU in bf16.  Pad batch to a multiple of 16 rows
    # (bf16 packs 16 sublanes per vreg); for large batches pad to the tile TM.
    h = x.reshape(B, to_linear).astype(jnp.bfloat16)
    tm = min(tm_max, _round_up(B, 16))
    m_pad = _round_up(B, tm)
    if m_pad != B:
        h = jnp.pad(h, ((0, m_pad - B), (0, 0)))

    # Single concatenated, 128-lane-aligned bias slab (one operand / one DMA
    # instead of four tiny ones).
    bias_parts = []
    for (_, b) in layers:
        out_d = b.shape[0]
        b2 = b.reshape(1, out_d).astype(jnp.float32)
        pad = _round_up(out_d, 128) - out_d
        if pad:
            b2 = jnp.pad(b2, ((0, 0), (0, pad)))
        bias_parts.append(b2)
    bias_slab = jnp.concatenate(bias_parts, axis=-1)

    grid = (m_pad // tm,)

    in_specs = [pl.BlockSpec((tm, to_linear), lambda i: (i, 0))]
    for (w, _) in layers:
        # Constant index_map: weight is DMA'd once, VMEM-resident across tiles.
        in_specs.append(pl.BlockSpec(w.shape, lambda i: (0, 0)))
    in_specs.append(pl.BlockSpec(bias_slab.shape, lambda i: (0, 0)))

    out_specs = (
        pl.BlockSpec((tm, to_linear), lambda i: (i, 0)),
        pl.BlockSpec((tm, latent_pad), lambda i: (i, 0)),
    )

    kernel = make_fused_autoencoder_kernel(layer_dims, n_enc, latent_pad)

    out_pad, latent_out = pl.pallas_call(
        kernel,
        grid=grid,
        in_specs=in_specs,
        out_specs=out_specs,
        out_shape=(
            jax.ShapeDtypeStruct((m_pad, to_linear), jnp.float32),
            jax.ShapeDtypeStruct((m_pad, latent_pad), jnp.float32),
        ),
        compiler_params=pltpu.CompilerParams(
            dimension_semantics=("parallel",),       # batch tiles across TCs (v7x)
            vmem_limit_bytes=16 * 1024 * 1024,       # few-MB footprint; v7x-safe
        ),
    )(h, *[w for (w, _) in layers], bias_slab)

    y = out_pad[:B].reshape(B, input_channels, input_width, input_height)
    z = latent_out[:B, :latent_dim]
    return dict(output=y, latent=z)


# ------------------------------ Reference check -------------------------------

def fc_autoencoder_ref(params, x, input_width, input_height, input_channels):
    """Pure-JAX f32 reference (weights dequantized from bf16)."""
    B = x.shape[0]
    to_linear = input_channels * input_width * input_height
    h = x.reshape(B, to_linear).astype(jnp.float32)
    for (w, b) in params["encoder"]:               # w already (in, out)
        h = jnp.maximum(h @ w.astype(jnp.float32) + b, 0.0)
    z = h
    for (w, b) in params["decoder"]:
        h = jnp.maximum(h @ w.astype(jnp.float32) + b, 0.0)
    return dict(output=h.reshape(B, input_channels, input_width, input_height),
                latent=z)


# ---------------------------------- Main --------------------------------------

if __name__ == "__main__":
    # Small shapes consistent with the module: NCHW input.
    B, C, W, H = 2, 4, 16, 16
    hidden_sizes = [128, 32]

    key = jax.random.PRNGKey(0)
    k_param, k_x = jax.random.split(key)

    params = init_fc_autoencoder_params(k_param, W, H, C, hidden_sizes)
    x = jax.random.normal(k_x, (B, C, W, H), jnp.float32)

    fwd = jax.jit(functools.partial(
        fc_autoencoder_forward,
        input_width=W, input_height=H, input_channels=C))

    out = fwd(params, x)
    out = jax.tree_util.tree_map(jax.block_until_ready, out)

    ref = fc_autoencoder_ref(params, x, W, H, C)
    assert out["output"].shape == (B, C, W, H)
    assert out["latent"].shape == (B, hidden_sizes[-1])
    # bf16 weights/activations in the kernel vs f32 reference -> loose tol.
    assert jnp.allclose(out["output"], ref["output"], atol=5e-2, rtol=5e-2)
    assert jnp.allclose(out["latent"], ref["latent"], atol=5e-2, rtol=5e-2)

    print("KERNEL_OK")
</pallas_src>

<mosaic_0001>
module attributes {stable_mosaic.version = 11 : i64} {
  func.func @kernel(%arg0: i32, %arg1: memref<16x1024xbf16, #tpu.memory_space<vmem>>, %arg2: memref<1024x128xbf16, #tpu.memory_space<vmem>>, %arg3: memref<128x32xbf16, #tpu.memory_space<vmem>>, %arg4: memref<32x128xbf16, #tpu.memory_space<vmem>>, %arg5: memref<128x1024xbf16, #tpu.memory_space<vmem>>, %arg6: memref<1x1408xf32, #tpu.memory_space<vmem>>, %arg7: memref<16x1024xf32, #tpu.memory_space<vmem>>, %arg8: memref<16x128xf32, #tpu.memory_space<vmem>>) attributes {dimension_semantics = [#tpu.dimension_semantics<parallel>], iteration_bounds = array<i64: 1>, scalar_prefetch = 0 : i64, scratch_operands = 0 : i64, tpu.core_type = #tpu.core_type<tc>, window_params = [{transform_indices = @transform_0, window_bounds = array<i64: 16, 1024>}, {pipeline_mode = #tpu.pipeline_mode<synchronous>, transform_indices = @transform_1, window_bounds = array<i64: 1024, 128>}, {pipeline_mode = #tpu.pipeline_mode<synchronous>, transform_indices = @transform_2, window_bounds = array<i64: 128, 32>}, {pipeline_mode = #tpu.pipeline_mode<synchronous>, transform_indices = @transform_3, window_bounds = array<i64: 32, 128>}, {pipeline_mode = #tpu.pipeline_mode<synchronous>, transform_indices = @transform_4, window_bounds = array<i64: 128, 1024>}, {pipeline_mode = #tpu.pipeline_mode<synchronous>, transform_indices = @transform_5, window_bounds = array<i64: 1, 1408>}, {transform_indices = @transform_6, window_bounds = array<i64: 16, 1024>}, {transform_indices = @transform_7, window_bounds = array<i64: 16, 128>}]} {
    %c0 = arith.constant 0 : index
    %c0_0 = arith.constant 0 : index
    %0 = vector.load %arg1[%c0, %c0_0] : memref<16x1024xbf16, #tpu.memory_space<vmem>>, vector<16x1024xbf16>
    %c0_1 = arith.constant 0 : index
    %c0_2 = arith.constant 0 : index
    %1 = vector.load %arg2[%c0_1, %c0_2] : memref<1024x128xbf16, #tpu.memory_space<vmem>>, vector<1024x128xbf16>
    %cst = arith.constant dense<0.000000e+00> : vector<16x128xf32>
    %2 = tpu.matmul %0, %1, %cst {dimension_numbers = #tpu.dot_dimension_numbers<[1], [0], [0], [1], [0, 0, 1, 1], [], []>} : vector<16x1024xbf16>, vector<1024x128xbf16>, vector<16x128xf32> -> vector<16x128xf32>
    %c0_3 = arith.constant 0 : index
    %c0_4 = arith.constant 0 : index
    %3 = vector.load %arg6[%c0_3, %c0_4] : memref<1x1408xf32, #tpu.memory_space<vmem>>, vector<1x128xf32>
    %4 = vector.broadcast %3 : vector<1x128xf32> to vector<16x128xf32>
    %5 = arith.addf %2, %4 : vector<16x128xf32>
    %cst_5 = arith.constant 0.000000e+00 : f32
    %6 = vector.broadcast %cst_5 : f32 to vector<16x128xf32>
    %7 = arith.maximumf %5, %6 : vector<16x128xf32>
    %8 = arith.truncf %7 : vector<16x128xf32> to vector<16x128xbf16>
    %c0_6 = arith.constant 0 : index
    %c0_7 = arith.constant 0 : index
    %9 = vector.load %arg3[%c0_6, %c0_7] : memref<128x32xbf16, #tpu.memory_space<vmem>>, vector<128x32xbf16>
    %cst_8 = arith.constant dense<0.000000e+00> : vector<16x32xf32>
    %10 = tpu.matmul %8, %9, %cst_8 {dimension_numbers = #tpu.dot_dimension_numbers<[1], [0], [0], [1], [0, 0, 1, 1], [], []>} : vector<16x128xbf16>, vector<128x32xbf16>, vector<16x32xf32> -> vector<16x32xf32>
    %c0_9 = arith.constant 0 : index
    %c128 = arith.constant 128 : index
    %11 = vector.load %arg6[%c0_9, %c128] : memref<1x1408xf32, #tpu.memory_space<vmem>>, vector<1x32xf32>
    %12 = vector.broadcast %11 : vector<1x32xf32> to vector<16x32xf32>
    %13 = arith.addf %10, %12 : vector<16x32xf32>
    %cst_10 = arith.constant 0.000000e+00 : f32
    %14 = vector.broadcast %cst_10 : f32 to vector<16x32xf32>
    %15 = arith.maximumf %13, %14 : vector<16x32xf32>
    %cst_11 = arith.constant 0.000000e+00 : f32
    %16 = vector.broadcast %cst_11 : f32 to vector<16x96xf32>
    %17 = tpu.concatenate %15, %16 in 1 : vector<16x32xf32>, vector<16x96xf32> -> vector<16x128xf32>
    %c0_12 = arith.constant 0 : index
    %c0_13 = arith.constant 0 : index
    %18 = vector.load %arg8[%c0_12, %c0_13] : memref<16x128xf32, #tpu.memory_space<vmem>>, vector<16x128xf32>
    tpu.vector_store %arg8[%c0_12, %c0_13], %17 {strides = array<i32>} : memref<16x128xf32, #tpu.memory_space<vmem>>, vector<16x128xf32>,
    %19 = arith.truncf %15 : vector<16x32xf32> to vector<16x32xbf16>
    %c0_14 = arith.constant 0 : index
    %c0_15 = arith.constant 0 : index
    %20 = vector.load %arg4[%c0_14, %c0_15] : memref<32x128xbf16, #tpu.memory_space<vmem>>, vector<32x128xbf16>
    %cst_16 = arith.constant dense<0.000000e+00> : vector<16x128xf32>
    %21 = tpu.matmul %19, %20, %cst_16 {dimension_numbers = #tpu.dot_dimension_numbers<[1], [0], [0], [1], [0, 0, 1, 1], [], []>} : vector<16x32xbf16>, vector<32x128xbf16>, vector<16x128xf32> -> vector<16x128xf32>
    %c0_17 = arith.constant 0 : index
    %c256 = arith.constant 256 : index
    %22 = vector.load %arg6[%c0_17, %c256] : memref<1x1408xf32, #tpu.memory_space<vmem>>, vector<1x128xf32>
    %23 = vector.broadcast %22 : vector<1x128xf32> to vector<16x128xf32>
    %24 = arith.addf %21, %23 : vector<16x128xf32>
    %cst_18 = arith.constant 0.000000e+00 : f32
    %25 = vector.broadcast %cst_18 : f32 to vector<16x128xf32>
    %26 = arith.maximumf %24, %25 : vector<16x128xf32>
    %27 = arith.truncf %26 : vector<16x128xf32> to vector<16x128xbf16>
    %c0_19 = arith.constant 0 : index
    %c0_20 = arith.constant 0 : index
    %28 = vector.load %arg5[%c0_19, %c0_20] : memref<128x1024xbf16, #tpu.memory_space<vmem>>, vector<128x1024xbf16>
    %cst_21 = arith.constant dense<0.000000e+00> : vector<16x1024xf32>
    %29 = tpu.matmul %27, %28, %cst_21 {dimension_numbers = #tpu.dot_dimension_numbers<[1], [0], [0], [1], [0, 0, 1, 1], [], []>} : vector<16x128xbf16>, vector<128x1024xbf16>, vector<16x1024xf32> -> vector<16x1024xf32>
    %c0_22 = arith.constant 0 : index
    %c384 = arith.constant 384 : index
    %30 = vector.load %arg6[%c0_22, %c384] : memref<1x1408xf32, #tpu.memory_space<vmem>>, vector<1x1024xf32>
    %31 = vector.broadcast %30 : vector<1x1024xf32> to vector<16x1024xf32>
    %32 = arith.addf %29, %31 : vector<16x1024xf32>
    %cst_23 = arith.constant 0.000000e+00 : f32
    %33 = vector.broadcast %cst_23 : f32 to vector<16x1024xf32>
    %34 = arith.maximumf %32, %33 : vector<16x1024xf32>
    %c0_24 = arith.constant 0 : index
    %c0_25 = arith.constant 0 : index
    %35 = vector.load %arg7[%c0_24, %c0_25] : memref<16x1024xf32, #tpu.memory_space<vmem>>, vector<16x1024xf32>
    tpu.vector_store %arg7[%c0_24, %c0_25], %34 {strides = array<i32>} : memref<16x1024xf32, #tpu.memory_space<vmem>>, vector<16x1024xf32>,
    return
  }
  func.func @transform_0(%arg0: i32) -> (i32, i32) {
    %c0_i32 = arith.constant 0 : i32
    %c0_i32_0 = arith.constant 0 : i32
    return %arg0, %c0_i32 : i32, i32
  }
  func.func @transform_1(%arg0: i32) -> (i32, i32) {
    %c0_i32 = arith.constant 0 : i32
    %c0_i32_0 = arith.constant 0 : i32
    %c0_i32_1 = arith.constant 0 : i32
    return %c0_i32, %c0_i32_0 : i32, i32
  }
  func.func @transform_2(%arg0: i32) -> (i32, i32) {
    %c0_i32 = arith.constant 0 : i32
    %c0_i32_0 = arith.constant 0 : i32
    %c0_i32_1 = arith.constant 0 : i32
    return %c0_i32, %c0_i32_0 : i32, i32
  }
  func.func @transform_3(%arg0: i32) -> (i32, i32) {
    %c0_i32 = arith.constant 0 : i32
    %c0_i32_0 = arith.constant 0 : i32
    %c0_i32_1 = arith.constant 0 : i32
    return %c0_i32, %c0_i32_0 : i32, i32
  }
  func.func @transform_4(%arg0: i32) -> (i32, i32) {
    %c0_i32 = arith.constant 0 : i32
    %c0_i32_0 = arith.constant 0 : i32
    %c0_i32_1 = arith.constant 0 : i32
    return %c0_i32, %c0_i32_0 : i32, i32
  }
  func.func @transform_5(%arg0: i32) -> (i32, i32) {
    %c0_i32 = arith.constant 0 : i32
    %c0_i32_0 = arith.constant 0 : i32
    %c0_i32_1 = arith.constant 0 : i32
    return %c0_i32, %c0_i32_0 : i32, i32
  }
  func.func @transform_6(%arg0: i32) -> (i32, i32) {
    %c0_i32 = arith.constant 0 : i32
    %c0_i32_0 = arith.constant 0 : i32
    return %arg0, %c0_i32 : i32, i32
  }
  func.func @transform_7(%arg0: i32) -> (i32, i32) {
    %c0_i32 = arith.constant 0 : i32
    %c0_i32_0 = arith.constant 0 : i32
    return %arg0, %c0_i32 : i32, i32
  }
}

</mosaic_0001>

<bundles_post_ra>
// kernel: fc_autoencoder_forward.1
= control target key start
LH: loop header
LB: loop body
LE: loop exit
PB: predicated region body
PF: predicated region fallthrough
CT: control target
= control target key end

     0   :  { %13 = vsyncpa [#allocation3], 0  ;;  %s2241_s0 = inlined_call_operand.vmem [shape: bf16[16,1024], index: 0, kind: input, shape index: {}]   ;;  %s2242_s1 = inlined_call_operand.hbm [shape: bf16[1024,128], index: 1, kind: input, shape index: {}]   ;;  %s2243_s2 = inlined_call_operand.vmem [shape: bf16[128,32], index: 2, kind: input, shape index: {}]   ;;  %s2244_s3 = inlined_call_operand.vmem [shape: bf16[32,128], index: 3, kind: input, shape index: {}]   ;;  %s2245_s4 = inlined_call_operand.hbm [shape: bf16[128,1024], index: 4, kind: input, shape index: {}]   ;;  %s2246_s5 = inlined_call_operand.vmem [shape: f32[1,1408], index: 5, kind: input, shape index: {}]   ;;  %s2247_s6 = inlined_call_operand.vmem [shape: f32[16,1024], index: 6, kind: output, shape index: {0}]   ;;  %s2248_s7 = inlined_call_operand.vmem [shape: f32[16,128], index: 7, kind: output, shape index: {1}]  }
   0x1   :  { %14 = vsyncpa [#allocation5], 0  ;;  %s2027_s24 = smov [#allocation2]   ;;  %s1979_s28 = scalar_lea.hbm %s2242_s1, 8192 }
   0x2   :  { %s22_s25 = sshll.u32 %s2027_s24, 4  ;;  %p1980_p0 = scmp.ne.s32.totalorder %s2242_s1, %s1979_s28  ;;  %s23_s25 = int_to_ptr.vmem [resolvable:$true] %s22_s25 }
   0x3   :  { %p1983_p1 = scmp.lt.u32.totalorder %s1979_s28, %s2242_s1 }
   0x5   :  { %p1985_p2 = pnand %p1983_p1, %p1980_p0 }
   0x7   :  { %1988 = shalt.err (!%p1985_p2)
}
   0x8   :  { %s1989_s10 = scalar_lea.vmem %s23_s25, 8192  ;;  %p1994_p4 = scmp.lt.s32.totalorder %s23_s25, %s23_s25 }
   0x9   :  { %p1990_p3 = scmp.ne.s32.totalorder %s23_s25, %s1989_s10  ;;  %p1995_p5 = scmp.lt.s32.totalorder %s1989_s10, %s1989_s10 }
   0xb   :  { %p1996_p6 = por %p1995_p5, %p1994_p4 }
   0xd   :  { %p1997_p7 = pnand %p1996_p6, %p1990_p3 }
   0xf   :  { %2000 = shalt.err (!%p1997_p7)
}
  0x10   :  { %s2028_s11 = smov 64   ;;  %s2029_s12 = smov 4  }
  0x11   :  { %28 = dma.hbm_to_vmem [thread:$0]  %s2242_s1, 8192, %s23_s25, [#allocation3], %s2028_s11, %s2028_s11, %s2029_s12  }
  0x12   :  { %s2030_s15 = smov [#allocation4]   ;;  %s2001_s19 = scalar_lea.hbm %s2245_s4, 8192 }
  0x13   :  { %s38_s16 = sshll.u32 %s2030_s15, 4  ;;  %p2002_p8 = scmp.ne.s32.totalorder %s2245_s4, %s2001_s19  ;;  %s39_s16 = int_to_ptr.vmem [resolvable:$true] %s38_s16 }
  0x14   :  { %p2005_p9 = scmp.lt.u32.totalorder %s2001_s19, %s2245_s4 }
  0x16   :  { %p2007_p10 = pnand %p2005_p9, %p2002_p8 }
  0x18   :  { %2010 = shalt.err (!%p2007_p10)
}
  0x19   :  { %s2011_s24 = scalar_lea.vmem %s39_s16, 8192  ;;  %p2016_p12 = scmp.lt.s32.totalorder %s39_s16, %s39_s16 }
  0x1a   :  { %p2012_p11 = scmp.ne.s32.totalorder %s39_s16, %s2011_s24  ;;  %p2017_p13 = scmp.lt.s32.totalorder %s2011_s24, %s2011_s24 }
  0x1c   :  { %p2018_p0 = por %p2017_p13, %p2016_p12 }
  0x1e   :  { %p2019_p1 = pnand %p2018_p0, %p2012_p11 }
  0x20   :  { %2022 = shalt.err (!%p2019_p1)
}
  0x21   :  { %s2031_s1 = smov 512   ;;  %s2032_s25 = smov 32  }
  0x22   :  { %44 = dma.hbm_to_vmem [thread:$0]  %s2245_s4, 8192, %s39_s16, [#allocation5], %s2031_s1, %s2031_s1, %s2032_s25  }
  0x23   :  { %2023 = dma.done.wait [#allocation3], 8192  }
  0x24   :  { %2024 = vsyncadd [#allocation3], 4294959104 }
  0x25   :  { %2025 = dma.done.wait [#allocation5], 8192  }
  0x26   :  { %2026 = vsyncadd [#allocation5], 4294959104  ;;  %v1905_v0 = vld [vmem:[#allocation2 + $0x40] sm:$0xff]   ;;  %v1909_v4 = vld [vmem:[#allocation2 + $0x48] sm:$0xff]   ;;  %vm2034_vm0 = vmmov 0   ;;  %vm902_vm1 = vcmask 261120  }
  0x27   :  { %v1906_v1 = vld [vmem:[#allocation2 + $0xc0] sm:$0xff]   ;;  %1768 = vmatprep.subr.bf16.mxu0 %v1905_v0  ;;  %v1910_v5 = vld [vmem:[#allocation2 + $0xc8] sm:$0xff]   ;;  %v1913_v8 = vld [vmem:[#allocation2 + $0x50] sm:$0xff]  }
  0x28   :  { %v1907_v2 = vld [vmem:[#allocation2] sm:$0xff]   ;;  %1790 = vmatprep.subr.bf16.mxu1 %v1906_v1  ;;  %v1911_v6 = vld [vmem:[#allocation2 + $0x8] sm:$0xff]   ;;  %v1914_v9 = vld [vmem:[#allocation2 + $0xd0] sm:$0xff]  }
  0x29   :  { %v1908_v3 = vld [vmem:[#allocation2 + $0x80] sm:$0xff]   ;;  %1769 = vmatpush3.bf16.msra.mxu0 %v1907_v2  ;;  %v1912_v7 = vld [vmem:[#allocation2 + $0x88] sm:$0xff]   ;;  %v1915_v10 = vld [vmem:[#allocation2 + $0x10] sm:$0xff]  }
  0x2a   :  { %1791 = vmatpush3.bf16.msra.mxu1 %v1908_v3  ;;  %1770 = vmatprep.subr.bf16.mxu0 %v1909_v4  ;;  %v1916_v11 = vld [vmem:[#allocation2 + $0x90] sm:$0xff]   ;;  %v1917_v12 = vld [vmem:[#allocation2 + $0x58] sm:$0xff]   ;;  %v1921_v16 = vld [vmem:[#allocation2 + $0x60] sm:$0xff]  }
  0x2b   :  { %1792 = vmatprep.subr.bf16.mxu1 %v1910_v5  ;;  %v1918_v13 = vld [vmem:[#allocation2 + $0xd8] sm:$0xff]   ;;  %v1922_v17 = vld [vmem:[#allocation2 + $0xe0] sm:$0xff]   ;;  %v1925_v20 = vld [vmem:[#allocation2 + $0x68] sm:$0xff]  }
  0x2c   :  { %v1919_v14 = vld [vmem:[#allocation2 + $0x18] sm:$0xff]   ;;  %v1923_v18 = vld [vmem:[#allocation2 + $0x20] sm:$0xff]   ;;  %v1926_v21 = vld [vmem:[#allocation2 + $0xe8] sm:$0xff]  }
  0x2d   :  { %1771 = vmatpush3.bf16.msra.mxu0 %v1911_v6  ;;  %v1920_v15 = vld [vmem:[#allocation2 + $0x98] sm:$0xff]   ;;  %v1924_v19 = vld [vmem:[#allocation2 + $0xa0] sm:$0xff]   ;;  %v1927_v22 = vld [vmem:[#allocation2 + $0x28] sm:$0xff]  }
  0x2e   :  { %1793 = vmatpush3.bf16.msra.mxu1 %v1912_v7  ;;  %1772 = vmatprep.subr.bf16.mxu0 %v1913_v8  ;;  %v1928_v23 = vld [vmem:[#allocation2 + $0xa8] sm:$0xff]   ;;  %v1929_v24 = vld [vmem:[#allocation2 + $0x70] sm:$0xff]   ;;  %v1933_v28 = vld [vmem:[#allocation2 + $0x78] sm:$0xff]  }
  0x2f   :  { %1794 = vmatprep.subr.bf16.mxu1 %v1914_v9  ;;  %v1930_v25 = vld [vmem:[#allocation2 + $0xf0] sm:$0xff]   ;;  %v1934_v29 = vld [vmem:[#allocation2 + $0xf8] sm:$0xff]   ;;  %v54_v32 = vld [vmem:[%s2241_s0] sm:$0xff] }
  0x30   :  { %v1931_v26 = vld [vmem:[#allocation2 + $0x30] sm:$0xff]   ;;  %v1935_v30 = vld [vmem:[#allocation2 + $0x38] sm:$0xff]   ;;  %v58_v33 = vld [vmem:[%s2241_s0 + $0x20] sm:$0xff] }
  0x31   :  { %1773 = vmatpush3.bf16.msra.mxu0 %v1915_v10  ;;  %v1932_v27 = vld [vmem:[#allocation2 + $0xb0] sm:$0xff]   ;;  %v1936_v31 = vld [vmem:[#allocation2 + $0xb8] sm:$0xff]   ;;  %v55_v34 = vld [vmem:[%s2241_s0 + $0x8] sm:$0xff]  ;;  %v1619_v35 = vcombine.low %v54_v32, %v58_v33  ;;  %v1620_v36 = vcombine.high %v54_v32, %v58_v33 }
  0x32   :  { %1795 = vmatpush3.bf16.msra.mxu1 %v1916_v11  ;;  %1774 = vmatprep.subr.bf16.mxu0 %v1917_v12  ;;  %v59_v37 = vld [vmem:[%s2241_s0 + $0x28] sm:$0xff]  ;;  %v1937_v40 = vld [vmem:[#allocation2 + $0x140] sm:$0xff]   ;;  %v1945_v48 = vld [vmem:[#allocation2 + $0x150] sm:$0xff]  }
  0x33   :  { %1796 = vmatprep.subr.bf16.mxu1 %v1918_v13  ;;  %v1621_v38 = vcombine.low %v55_v34, %v59_v37  ;;  %v1622_v39 = vcombine.high %v55_v34, %v59_v37  ;;  %653 = vmatprep.mubr.bf16.mxu0 %v1620_v36  ;;  %v1938_v41 = vld [vmem:[#allocation2 + $0x1c0] sm:$0xff]   ;;  %v1941_v44 = vld [vmem:[#allocation2 + $0x148] sm:$0xff]   ;;  %v1946_v49 = vld [vmem:[#allocation2 + $0x1d0] sm:$0xff]  }
  0x34   :  { %v1939_v42 = vld [vmem:[#allocation2 + $0x100] sm:$0xff]   ;;  %v1942_v45 = vld [vmem:[#allocation2 + $0x1c8] sm:$0xff]   ;;  %v1947_v50 = vld [vmem:[#allocation2 + $0x110] sm:$0xff]  }
  0x35   :  { %1775 = vmatpush3.bf16.msra.mxu0 %v1919_v14  ;;  %694 = vmatprep.mubr.bf16.mxu1 %v1622_v39  ;;  %v1940_v43 = vld [vmem:[#allocation2 + $0x180] sm:$0xff]   ;;  %v1943_v46 = vld [vmem:[#allocation2 + $0x108] sm:$0xff]   ;;  %v1948_v51 = vld [vmem:[#allocation2 + $0x190] sm:$0xff]  }
  0x36   :  { %1797 = vmatpush3.bf16.msra.mxu1 %v1920_v15  ;;  %1776 = vmatprep.subr.bf16.mxu0 %v1921_v16  ;;  %v1944_v47 = vld [vmem:[#allocation2 + $0x188] sm:$0xff]   ;;  %v1949_v52 = vld [vmem:[#allocation2 + $0x158] sm:$0xff]   ;;  %v1953_v56 = vld [vmem:[#allocation2 + $0x160] sm:$0xff]  }
  0x37   :  { %1798 = vmatprep.subr.bf16.mxu1 %v1922_v17  ;;  %v1950_v53 = vld [vmem:[#allocation2 + $0x1d8] sm:$0xff]   ;;  %v1954_v57 = vld [vmem:[#allocation2 + $0x1e0] sm:$0xff]   ;;  %v1957_v60 = vld [vmem:[#allocation2 + $0x168] sm:$0xff]   ;;  %v2033_v17 = vmov 0.0  }
  0x38   :  { %v1951_v54 = vld [vmem:[#allocation2 + $0x118] sm:$0xff]   ;;  %v1955_v58 = vld [vmem:[#allocation2 + $0x120] sm:$0xff]   ;;  %v1958_v61 = vld [vmem:[#allocation2 + $0x1e8] sm:$0xff]  }
  0x39   :  { %1777 = vmatpush3.bf16.msra.mxu0 %v1923_v18  ;;  %v1952_v55 = vld [vmem:[#allocation2 + $0x198] sm:$0xff]   ;;  %v1956_v59 = vld [vmem:[#allocation2 + $0x1a0] sm:$0xff]   ;;  %v1959_v62 = vld [vmem:[#allocation2 + $0x128] sm:$0xff]  }
  0x3a   :  { %1799 = vmatpush3.bf16.msra.mxu1 %v1924_v19  ;;  %1778 = vmatprep.subr.bf16.mxu0 %v1925_v20  ;;  %v1960_v63 = vld [vmem:[#allocation2 + $0x1a8] sm:$0xff]   ;;  %v1961_v0 = vld [vmem:[#allocation2 + $0x170] sm:$0xff]   ;;  %v1965_v4 = vld [vmem:[#allocation2 + $0x178] sm:$0xff]  }
  0x3b   :  { %1800 = vmatprep.subr.bf16.mxu1 %v1926_v21  ;;  %v1962_v1 = vld [vmem:[#allocation2 + $0x1f0] sm:$0xff]   ;;  %v1966_v5 = vld [vmem:[#allocation2 + $0x1f8] sm:$0xff]   ;;  %v1969_v16 = vld [vmem:[%s2243_s2] sm:$0xff]  }
  0x3c   :  { %v1963_v2 = vld [vmem:[#allocation2 + $0x130] sm:$0xff]   ;;  %v1967_v6 = vld [vmem:[#allocation2 + $0x138] sm:$0xff]   ;;  %v1970_v18 = vld [vmem:[%s2243_s2 + $0x8] sm:$0xff]  }
  0x3d   :  { %1779 = vmatpush3.bf16.msra.mxu0 %v1927_v22  ;;  %v1964_v3 = vld [vmem:[#allocation2 + $0x1b0] sm:$0xff]   ;;  %v1968_v7 = vld [vmem:[#allocation2 + $0x1b8] sm:$0xff]   ;;  %v1973_v21 = vld [vmem:[%s2243_s2 + $0x20] sm:$0xff]  }
  0x3e   :  { %1801 = vmatpush3.bf16.msra.mxu1 %v1928_v23  ;;  %1780 = vmatprep.subr.bf16.mxu0 %v1929_v24  ;;  %v56_v8 = vld [vmem:[%s2241_s0 + $0x10] sm:$0xff]  ;;  %v57_v12 = vld [vmem:[%s2241_s0 + $0x18] sm:$0xff]  ;;  %v1974_v22 = vld [vmem:[%s2243_s2 + $0x28] sm:$0xff]  }
  0x3f   :  { %1802 = vmatprep.subr.bf16.mxu1 %v1930_v25  ;;  %v60_v9 = vld [vmem:[%s2241_s0 + $0x30] sm:$0xff]  ;;  %v61_v13 = vld [vmem:[%s2241_s0 + $0x38] sm:$0xff] }
  0x40   :  { %v1623_v10 = vcombine.low %v56_v8, %v60_v9  ;;  %v1624_v11 = vcombine.high %v56_v8, %v60_v9  ;;  %v1625_v14 = vcombine.low %v57_v12, %v61_v13  ;;  %v1626_v15 = vcombine.high %v57_v12, %v61_v13  ;;  %v1971_v19 = vld [vmem:[%s2243_s2 + $0x10] sm:$0xff]   ;;  %v1972_v20 = vld [vmem:[%s2243_s2 + $0x18] sm:$0xff]   ;;  %v991_v8 = vld [vmem:[#allocation4 + $0x68] sm:$0xff] }
  0x41   :  { %1781 = vmatpush3.bf16.msra.mxu0 %v1931_v26  ;;  %v1975_v23 = vld [vmem:[%s2243_s2 + $0x30] sm:$0xff]   ;;  %v1976_v24 = vld [vmem:[%s2243_s2 + $0x38] sm:$0xff]   ;;  %v999_v12 = vld [vmem:[#allocation4 + $0xa8] sm:$0xff] }
  0x42   :  { %1803 = vmatpush3.bf16.msra.mxu1 %v1932_v27  ;;  %1782 = vmatprep.subr.bf16.mxu0 %v1933_v28  ;;  %v1618_v27 = vld [vmem:[%s2246_s5] ss:$0 sm:$0xff] }
  0x43   :  { %1804 = vmatprep.subr.bf16.mxu1 %v1934_v29 }
  0x45   :  { %1783 = vmatpush3.bf16.msra.mxu0 %v1935_v30 }
  0x46   :  { %1805 = vmatpush3.bf16.msra.mxu1 %v1936_v31  ;;  %1812 = vmatprep.subr.bf16.mxu0 %v1937_v40 }
  0x47   :  { %1834 = vmatprep.subr.bf16.mxu1 %v1938_v41 }
  0x48   :  { %654 = vmatmul.mubr.bf16.vlgmr.msra.gmra.mrb[0].mxu0 %v1619_v35 }
  0x49   :  { %695 = vmatmul.mubr.bf16.vlgmr.msra.gmra.mrb[0].mxu1 %v1621_v38  ;;  %1813 = vmatpush3.bf16.msra.mxu0 %v1939_v42 }
  0x4a   :  { %1835 = vmatpush3.bf16.msra.mxu1 %v1940_v43  ;;  %1814 = vmatprep.subr.bf16.mxu0 %v1941_v44 }
  0x4b   :  { %1836 = vmatprep.subr.bf16.mxu1 %v1942_v45  ;;  %735 = vmatprep.mubr.bf16.mxu0 %v1624_v11  ;;  %v995_v11 = vld [vmem:[#allocation4 + $0x88] sm:$0xff] }
  0x4c   :  { %776 = vmatprep.mubr.bf16.mxu1 %v1626_v15  ;;  %v1723_v13 = vcombine.high %v995_v11, %v999_v12  ;;  %v1003_v15 = vld [vmem:[#allocation4 + $0xc8] sm:$0xff] }
  0x4d   :  { %1815 = vmatpush3.bf16.msra.mxu0 %v1943_v46 }
  0x4e   :  { %1837 = vmatpush3.bf16.msra.mxu1 %v1944_v47  ;;  %1816 = vmatprep.subr.bf16.mxu0 %v1945_v48 }
  0x4f   :  { %1838 = vmatprep.subr.bf16.mxu1 %v1946_v49 }
  0x51   :  { %1817 = vmatpush3.bf16.msra.mxu0 %v1947_v50 }
  0x52   :  { %1839 = vmatpush3.bf16.msra.mxu1 %v1948_v51  ;;  %1818 = vmatprep.subr.bf16.mxu0 %v1949_v52 }
  0x53   :  { %1840 = vmatprep.subr.bf16.mxu1 %v1950_v53 }
  0x55   :  { %1819 = vmatpush3.bf16.msra.mxu0 %v1951_v54 }
  0x56   :  { %1841 = vmatpush3.bf16.msra.mxu1 %v1952_v55  ;;  %1820 = vmatprep.subr.bf16.mxu0 %v1953_v56 }
  0x57   :  { %1842 = vmatprep.subr.bf16.mxu1 %v1954_v57 }
  0x59   :  { %1821 = vmatpush3.bf16.msra.mxu0 %v1955_v58 }
  0x5a   :  { %1843 = vmatpush3.bf16.msra.mxu1 %v1956_v59  ;;  %1822 = vmatprep.subr.bf16.mxu0 %v1957_v60 }
  0x5b   :  { %1844 = vmatprep.subr.bf16.mxu1 %v1958_v61  ;;  %v1977_v61 = vld [vmem:[%s2244_s3] sm:$0xff]  }
  0x5d   :  { %1823 = vmatpush3.bf16.msra.mxu0 %v1959_v62  ;;  %v1978_v62 = vld [vmem:[%s2244_s3 + $0x8] sm:$0xff]  }
  0x5e   :  { %1845 = vmatpush3.bf16.msra.mxu1 %v1960_v63  ;;  %1824 = vmatprep.subr.bf16.mxu0 %v1961_v0  ;;  %v978_v63 = vld [vmem:[#allocation4] sm:$0xff] }
  0x5f   :  { %1846 = vmatprep.subr.bf16.mxu1 %v1962_v1  ;;  %v982_v0 = vld [vmem:[#allocation4 + $0x20] sm:$0xff]  ;;  %v979_v1 = vld [vmem:[#allocation4 + $0x8] sm:$0xff] }
  0x61   :  { %1825 = vmatpush3.bf16.msra.mxu0 %v1963_v2  ;;  %v1704_v2 = vcombine.low %v978_v63, %v982_v0 }
  0x62   :  { %1847 = vmatpush3.bf16.msra.mxu1 %v1964_v3  ;;  %1826 = vmatprep.subr.bf16.mxu0 %v1965_v4  ;;  %v1705_v3 = vcombine.high %v978_v63, %v982_v0  ;;  %v983_v4 = vld [vmem:[#allocation4 + $0x28] sm:$0xff] }
  0x63   :  { %1848 = vmatprep.subr.bf16.mxu1 %v1966_v5  ;;  %v1706_v5 = vcombine.low %v979_v1, %v983_v4  ;;  %v1031_v63 = vld [vmem:[#allocation4 + $0x1a8] sm:$0xff] }
  0x65   :  { %1827 = vmatpush3.bf16.msra.mxu0 %v1967_v6  ;;  %v1707_v6 = vcombine.high %v979_v1, %v983_v4  ;;  %v1038_v4 = vld [vmem:[#allocation4 + $0x1e0] sm:$0xff] }
  0x66   :  { %1849 = vmatpush3.bf16.msra.mxu1 %v1968_v7  ;;  %1868 = vmatprep.subr.bf16.mxu0 %v2033_v17  ;;  %v987_v7 = vld [vmem:[#allocation4 + $0x48] sm:$0xff] }
  0x67   :  { %1888 = vmatprep.subr.bf16.mxu1 %v2033_v17  ;;  %v1715_v9 = vcombine.high %v987_v7, %v991_v8 }
  0x68   :  { %736 = vmatmul.mubr.bf16.vlgmr.msra.gmra.mrb[4].mxu0 %v1623_v10  ;;  %v1714_v10 = vcombine.low %v987_v7, %v991_v8  ;;  %v1039_v7 = vld [vmem:[#allocation4 + $0x1e8] sm:$0xff] }
  0x69   :  { %777 = vmatmul.mubr.bf16.vlgmr.msra.gmra.mrb[4].mxu1 %v1625_v14  ;;  %1869 = vmatpush3.bf16.msra.mxu0 %v1969_v16  ;;  %v1722_v14 = vcombine.low %v995_v11, %v999_v12  ;;  %v1007_v16 = vld [vmem:[#allocation4 + $0xe8] sm:$0xff]  ;;  %v980_v11 = vld [vmem:[#allocation4 + $0x10] sm:$0xff] }
  0x6a   :  { %1870 = vmatprep.subr.bf16.mxu0 %v2033_v17  ;;  %1884 = vmatprep.mubr.msk.bf16.mxu0 %vm2034_vm0, %v2033_v17  ;;  %v984_v12 = vld [vmem:[#allocation4 + $0x30] sm:$0xff] }
  0x6b   :  { %1892 = vmatprep.mubr.msk.bf16.mxu1 %vm2034_vm0, %v2033_v17  ;;  %1889 = vmatpush3.bf16.msra.mxu1 %v1977_v61  ;;  %v1027_v61 = vld [vmem:[#allocation4 + $0x188] sm:$0xff] }
  0x6c   :  { %1890 = vmatprep.subr.bf16.mxu1 %v2033_v17  ;;  %v1754_v1 = vcombine.low %v1027_v61, %v1031_v63 }
  0x6d   :  { %1871 = vmatpush3.bf16.msra.mxu0 %v1970_v18  ;;  %v1730_v18 = vcombine.low %v1003_v15, %v1007_v16 }
  0x6e   :  { %1872 = vmatprep.subr.bf16.mxu0 %v2033_v17 }
  0x6f   :  { %1891 = vmatpush3.bf16.msra.mxu1 %v1978_v62 }
  0x70   :  { %1404 = vmatprep.subr.bf16.mxu1 %v1705_v3  ;;  %v1034_v3 = vld [vmem:[#allocation4 + $0x1c0] sm:$0xff] }
  0x71   :  { %1873 = vmatpush3.bf16.msra.mxu0 %v1971_v19  ;;  %v1011_v19 = vld [vmem:[#allocation4 + $0x108] sm:$0xff]  ;;  %v1760_v8 = vcombine.low %v1034_v3, %v1038_v4 }
  0x72   :  { %1874 = vmatprep.subr.bf16.mxu0 %v2033_v17 }
  0x75   :  { %1875 = vmatpush3.bf16.msra.mxu0 %v1972_v20  ;;  %v1015_v20 = vld [vmem:[#allocation4 + $0x128] sm:$0xff] }
  0x76   :  { %1876 = vmatprep.subr.bf16.mxu0 %v2033_v17 }
  0x79   :  { %1877 = vmatpush3.bf16.msra.mxu0 %v1973_v21  ;;  %v1739_v21 = vcombine.high %v1011_v19, %v1015_v20 }
  0x7a   :  { %1878 = vmatprep.subr.bf16.mxu0 %v2033_v17 }
  0x7d   :  { %1879 = vmatpush3.bf16.msra.mxu0 %v1974_v22  ;;  %v1738_v22 = vcombine.low %v1011_v19, %v1015_v20  ;;  %v1700_v20 = vld [vmem:[%s2246_s5 + $0x2] ss:$0 sm:$0xff] }
  0x7e   :  { %1880 = vmatprep.subr.bf16.mxu0 %v2033_v17 }
  0x81   :  { %1881 = vmatpush3.bf16.msra.mxu0 %v1975_v23  ;;  %v1019_v23 = vld [vmem:[#allocation4 + $0x148] sm:$0xff] }
  0x82   :  { %1882 = vmatprep.subr.bf16.mxu0 %v2033_v17  ;;  %v1731_v17 = vcombine.high %v1003_v15, %v1007_v16  ;;  %v1709_v15 = vcombine.high %v980_v11, %v984_v12  ;;  %v985_v16 = vld [vmem:[#allocation4 + $0x38] sm:$0xff] }
  0x85   :  { %1883 = vmatpush3.bf16.msra.mxu0 %v1976_v24  ;;  %v1023_v24 = vld [vmem:[#allocation4 + $0x168] sm:$0xff] }
  0x86   :  { %1447 = vmatprep.subr.bf16.mxu0 %v1707_v6  ;;  %v1761_v6 = vcombine.high %v1034_v3, %v1038_v4  ;;  %v1028_v4 = vld [vmem:[#allocation4 + $0x190] sm:$0xff] }
 0x11b   :  { %v1784_v25 = vpop.f32.mrb[0].mxu0 }
 0x11c   :  { %v1806_v26 = vpop.f32.mrb[0].mxu1  ;;  %v1785_v28 = vpop.f32.mrb[1].mxu0 }
 0x11d   :  { %v1786_v29 = vadd.f32 %v1785_v28, %v1784_v25  ;;  %v1807_v30 = vpop.f32.mrb[1].mxu1  ;;  %v1787_v31 = vpop.f32.mrb[2].mxu0  ;;  %v1747_v25 = vcombine.high %v1019_v23, %v1023_v24 }
 0x11e   :  { %v1808_v32 = vadd.f32 %v1807_v30, %v1806_v26  ;;  %v1809_v33 = vpop.f32.mrb[2].mxu1  ;;  %v1788_v34 = vpop.f32.mrb[3].mxu0  ;;  %v1746_v26 = vcombine.low %v1019_v23, %v1023_v24 }
 0x11f   :  { %v656_v35 = vadd.f32 %v1786_v29, %v1618_v27  ;;  %v1789_v36 = vadd.f32 %v1788_v34, %v1787_v31  ;;  %v1810_v37 = vpop.f32.mrb[3].mxu1 }
 0x120   :  { %v1811_v38 = vadd.f32 %v1810_v37, %v1809_v33 }
 0x121   :  { %v697_v39 = vadd.f32 %v1808_v32, %v656_v35  ;;  %v659_v40 = vadd.f32 %v1789_v36, %v1618_v27  ;;  %v1691_v27 = vld [vmem:[%s2246_s5 + $0x1] ss:$0 sm:$0xff] }
 0x122   :  { %v986_v35 = vld [vmem:[#allocation4 + $0x40] sm:$0xff] }
 0x123   :  { %v700_v41 = vadd.f32 %v1811_v38, %v659_v40  ;;  %v990_v36 = vld [vmem:[#allocation4 + $0x60] sm:$0xff] }
 0x13b   :  { %v1828_v42 = vpop.f32.mrb[4].mxu0 }
 0x13c   :  { %v1850_v43 = vpop.f32.mrb[4].mxu1  ;;  %v1829_v44 = vpop.f32.mrb[5].mxu0 }
 0x13d   :  { %v1830_v45 = vadd.f32 %v1829_v44, %v1828_v42  ;;  %v1851_v46 = vpop.f32.mrb[5].mxu1  ;;  %v1831_v47 = vpop.f32.mrb[6].mxu0  ;;  %v994_v42 = vld [vmem:[#allocation4 + $0x80] sm:$0xff]  ;;  %v1712_v44 = vcombine.low %v986_v35, %v990_v36 }
 0x13e   :  { %v1852_v48 = vadd.f32 %v1851_v46, %v1850_v43  ;;  %v1853_v49 = vpop.f32.mrb[6].mxu1  ;;  %v1832_v50 = vpop.f32.mrb[7].mxu0  ;;  %v998_v43 = vld [vmem:[#allocation4 + $0xa0] sm:$0xff] }
 0x13f   :  { %v738_v51 = vadd.f32 %v1830_v45, %v697_v39  ;;  %v1833_v52 = vadd.f32 %v1832_v50, %v1831_v47  ;;  %v1854_v53 = vpop.f32.mrb[7].mxu1  ;;  %v1721_v45 = vcombine.high %v994_v42, %v998_v43  ;;  %v1002_v46 = vld [vmem:[#allocation4 + $0xc0] sm:$0xff] }
 0x140   :  { %v1855_v54 = vadd.f32 %v1854_v53, %v1853_v49  ;;  %v1006_v47 = vld [vmem:[#allocation4 + $0xe0] sm:$0xff] }
 0x141   :  { %v779_v55 = vadd.f32 %v1852_v48, %v738_v51  ;;  %v741_v56 = vadd.f32 %v1833_v52, %v700_v41  ;;  %v1713_v41 = vcombine.high %v986_v35, %v990_v36  ;;  %v1720_v48 = vcombine.low %v994_v42, %v998_v43  ;;  %v1010_v50 = vld [vmem:[#allocation4 + $0x100] sm:$0xff]  ;;  %v996_v36 = vld [vmem:[#allocation4 + $0x90] sm:$0xff] }
 0x142   :  { %v1729_v49 = vcombine.high %v1002_v46, %v1006_v47  ;;  %v1014_v51 = vld [vmem:[#allocation4 + $0x120] sm:$0xff]  ;;  %v1728_v52 = vcombine.low %v1002_v46, %v1006_v47  ;;  %v1005_v46 = vld [vmem:[#allocation4 + $0xd8] sm:$0xff] }
 0x143   :  { %v782_v57 = vadd.f32 %v1855_v54, %v741_v56  ;;  %v785_v58 = vmax.f32 %v779_v55, 0.0  ;;  %v1737_v53 = vcombine.high %v1010_v50, %v1014_v51  ;;  %v1018_v54 = vld [vmem:[#allocation4 + $0x140] sm:$0xff]  ;;  %v1736_v56 = vcombine.low %v1010_v50, %v1014_v51  ;;  %v1009_v47 = vld [vmem:[#allocation4 + $0xf8] sm:$0xff] }
 0x144   :  { %v1022_v55 = vld [vmem:[#allocation4 + $0x160] sm:$0xff]  ;;  %v1735_v51 = vcombine.high %v1005_v46, %v1009_v47 }
 0x145   :  { %v786_v59 = vmax.f32 %v782_v57, 0.0  ;;  %v1745_v57 = vcombine.high %v1018_v54, %v1022_v55 }
 0x147   :  { %v787_v60 = vpack.c.bf16 %v786_v59, %v785_v58  ;;  %v1744_v58 = vcombine.low %v1018_v54, %v1022_v55  ;;  %v1026_v59 = vld [vmem:[#allocation4 + $0x180] sm:$0xff]  ;;  %v1013_v54 = vld [vmem:[#allocation4 + $0x118] sm:$0xff] }
 0x148   :  { %v1017_v55 = vld [vmem:[#allocation4 + $0x138] sm:$0xff] }
 0x149   :  { %1885 = vmatmul.mubr.bf16.vlgmr.msra.gmra.mrb[8].mxu0 %v787_v60  ;;  %v1030_v60 = vld [vmem:[#allocation4 + $0x1a0] sm:$0xff] }
 0x14a   :  { %1448 = vmatpush1.bf16.msra.mxu0 %v1706_v5  ;;  %v1753_v62 = vcombine.high %v1026_v59, %v1030_v60  ;;  %v1752_v0 = vcombine.low %v1026_v59, %v1030_v60  ;;  %v1035_v5 = vld [vmem:[#allocation4 + $0x1c8] sm:$0xff]  ;;  %v1743_v59 = vcombine.high %v1013_v54, %v1017_v55  ;;  %v1020_v60 = vld [vmem:[#allocation4 + $0x150] sm:$0xff] }
 0x14b   :  { %1449 = vmatprep.subr.bf16.mxu0 %v1715_v9  ;;  %v1762_v9 = vcombine.low %v1035_v5, %v1039_v7 }
 0x14e   :  { %1450 = vmatpush1.bf16.msra.mxu0 %v1714_v10  ;;  %v1763_v10 = vcombine.high %v1035_v5, %v1039_v7  ;;  %v1032_v5 = vld [vmem:[#allocation4 + $0x1b0] sm:$0xff]  ;;  %v1033_v7 = vld [vmem:[#allocation4 + $0x1b8] sm:$0xff] }
 0x14f   :  { %1451 = vmatprep.subr.bf16.mxu0 %v1723_v13  ;;  %v981_v13 = vld [vmem:[#allocation4 + $0x18] sm:$0xff] }
 0x150   :  { %v1711_v19 = vcombine.high %v981_v13, %v985_v16 }
 0x152   :  { %1452 = vmatpush1.bf16.msra.mxu0 %v1722_v14  ;;  %v1708_v14 = vcombine.low %v980_v11, %v984_v12  ;;  %v1036_v12 = vld [vmem:[#allocation4 + $0x1d0] sm:$0xff] }
 0x153   :  { %1453 = vmatprep.subr.bf16.mxu0 %v1731_v17  ;;  %v2035_v17 = vmov 0  }
 0x154   :  { %1479 = vmatprep.mubr.bf16.mxu0 %v2035_v17 }
 0x156   :  { %1454 = vmatpush1.bf16.msra.mxu0 %v1730_v18  ;;  %v1710_v18 = vcombine.low %v981_v13, %v985_v16  ;;  %v1040_v13 = vld [vmem:[#allocation4 + $0x1f0] sm:$0xff]  ;;  %v1756_v16 = vcombine.low %v1028_v4, %v1032_v5 }
 0x157   :  { %1455 = vmatprep.subr.bf16.mxu0 %v1739_v21 }
 0x15a   :  { %1456 = vmatpush1.bf16.msra.mxu0 %v1738_v22 }
 0x15b   :  { %1457 = vmatprep.subr.bf16.mxu0 %v1747_v25 }
 0x15e   :  { %1458 = vmatpush1.bf16.msra.mxu0 %v1746_v26 }
 0x21c   :  { %v893_v28 = vpop.f32.mrb[8].mxu0 }
 0x21d   :  { %v894_v29 = vadd.f32 %v1691_v27, %v893_v28  ;;  %v1886_v30 = vpop.f32.mrb[9].mxu0  ;;  %v992_v28 = vld [vmem:[#allocation4 + $0x70] sm:$0xff] }
 0x21e   :  { %v896_v31 = vpop.f32.mrb[10].mxu0  ;;  %v993_v30 = vld [vmem:[#allocation4 + $0x78] sm:$0xff] }
 0x21f   :  { %v900_v32 = vmax.f32 %v894_v29, 0.0  ;;  %v897_v33 = vadd.f32 %v1691_v27, %v896_v31  ;;  %v1887_v34 = vpop.f32.mrb[11].mxu0  ;;  %v988_v27 = vld [vmem:[#allocation4 + $0x50] sm:$0xff]  ;;  %v989_v29 = vld [vmem:[#allocation4 + $0x58] sm:$0xff] }
 0x220   :  { %v1717_v34 = vcombine.high %v988_v27, %v992_v28  ;;  %v1719_v35 = vcombine.high %v989_v29, %v993_v30 }
 0x221   :  { %v903_v37 = vsel %vm902_vm1, %v900_v32, 0.0  ;;  %v901_v38 = vmax.f32 %v897_v33, 0.0 }
 0x222   :  { %905 = vst [vmem:[%s2248_s7] sm:$0xff] %v903_v37  ;;  %v1000_v37 = vld [vmem:[#allocation4 + $0xb0] sm:$0xff] }
 0x223   :  { %v904_v39 = vsel %vm902_vm1, %v901_v38, 0.0  ;;  %v907_v40 = vpack.c.bf16 %v901_v38, %v900_v32  ;;  %v997_v38 = vld [vmem:[#allocation4 + $0x98] sm:$0xff]  ;;  %v1725_v42 = vcombine.high %v996_v36, %v1000_v37 }
 0x224   :  { %906 = vst [vmem:[%s2248_s7 + $0x8] sm:$0xff] %v904_v39  ;;  %v1001_v39 = vld [vmem:[#allocation4 + $0xb8] sm:$0xff] }
 0x225   :  { %1893 = vmatmul.mubr.msk.bf16.vlgmr.msra.gmra.mrb[8].mxu1 %vm902_vm1, %v907_v40  ;;  %v1716_v40 = vcombine.low %v988_v27, %v992_v28  ;;  %v1727_v43 = vcombine.high %v997_v38, %v1001_v39 }
 0x226   :  { %1405 = vmatpush1.bf16.msra.mxu1 %v1704_v2  ;;  %v1755_v2 = vcombine.high %v1027_v61, %v1031_v63  ;;  %1436 = vmatprep.mubr.bf16.mxu1 %v2035_v17  ;;  %v1024_v61 = vld [vmem:[#allocation4 + $0x170] sm:$0xff]  ;;  %v1025_v63 = vld [vmem:[#allocation4 + $0x178] sm:$0xff] }
 0x227   :  { %1406 = vmatprep.subr.bf16.mxu1 %v1713_v41  ;;  %v1718_v41 = vcombine.low %v989_v29, %v993_v30 }
 0x228   :  { %1459 = vmatprep.subr.bf16.mxu0 %v1755_v2  ;;  %v1749_v2 = vcombine.high %v1020_v60, %v1024_v61 }
 0x229   :  { %1460 = vmatpush1.bf16.msra.mxu0 %v1754_v1  ;;  %v1742_v1 = vcombine.low %v1013_v54, %v1017_v55 }
 0x22a   :  { %1407 = vmatpush1.bf16.msra.mxu1 %v1712_v44  ;;  %1461 = vmatprep.subr.bf16.mxu0 %v1763_v10  ;;  %v1004_v44 = vld [vmem:[#allocation4 + $0xd0] sm:$0xff]  ;;  %v1757_v10 = vcombine.high %v1028_v4, %v1032_v5 }
 0x22b   :  { %1408 = vmatprep.subr.bf16.mxu1 %v1721_v45  ;;  %v1008_v45 = vld [vmem:[#allocation4 + $0xf0] sm:$0xff] }
 0x22c   :  { %v1733_v50 = vcombine.high %v1004_v44, %v1008_v45 }
 0x22d   :  { %1462 = vmatpush1.bf16.msra.mxu0 %v1762_v9 }
 0x22e   :  { %1409 = vmatpush1.bf16.msra.mxu1 %v1720_v48  ;;  %1533 = vmatprep.subr.bf16.mxu0 %v1711_v19  ;;  %v1724_v48 = vcombine.low %v996_v36, %v1000_v37 }
 0x22f   :  { %1410 = vmatprep.subr.bf16.mxu1 %v1729_v49  ;;  %v1726_v49 = vcombine.low %v997_v38, %v1001_v39 }
 0x232   :  { %1411 = vmatpush1.bf16.msra.mxu1 %v1728_v52  ;;  %v1012_v52 = vld [vmem:[#allocation4 + $0x110] sm:$0xff] }
 0x233   :  { %1412 = vmatprep.subr.bf16.mxu1 %v1737_v53  ;;  %v1016_v53 = vld [vmem:[#allocation4 + $0x130] sm:$0xff] }
 0x236   :  { %1413 = vmatpush1.bf16.msra.mxu1 %v1736_v56  ;;  %v1732_v56 = vcombine.low %v1004_v44, %v1008_v45 }
 0x237   :  { %1414 = vmatprep.subr.bf16.mxu1 %v1745_v57  ;;  %v1734_v57 = vcombine.low %v1005_v46, %v1009_v47 }
 0x23a   :  { %1415 = vmatpush1.bf16.msra.mxu1 %v1744_v58  ;;  %v1741_v58 = vcombine.high %v1012_v52, %v1016_v53 }
 0x23b   :  { %1416 = vmatprep.subr.bf16.mxu1 %v1753_v62  ;;  %v1021_v62 = vld [vmem:[#allocation4 + $0x158] sm:$0xff] }
 0x23c   :  { %v1751_v3 = vcombine.high %v1021_v62, %v1025_v63  ;;  %v1750_v9 = vcombine.low %v1021_v62, %v1025_v63 }
 0x23e   :  { %1417 = vmatpush1.bf16.msra.mxu1 %v1752_v0  ;;  %v1740_v0 = vcombine.low %v1012_v52, %v1016_v53 }
 0x23f   :  { %1418 = vmatprep.subr.bf16.mxu1 %v1761_v6  ;;  %v1029_v6 = vld [vmem:[#allocation4 + $0x198] sm:$0xff] }
 0x240   :  { %v1759_v11 = vcombine.high %v1029_v6, %v1033_v7 }
 0x242   :  { %1419 = vmatpush1.bf16.msra.mxu1 %v1760_v8  ;;  %v1748_v8 = vcombine.low %v1020_v60, %v1024_v61 }
 0x243   :  { %1490 = vmatprep.subr.bf16.mxu1 %v1709_v15  ;;  %v1041_v15 = vld [vmem:[#allocation4 + $0x1f8] sm:$0xff] }
 0x2f8   :  { %v968_v21 = vpop.f32.mrb[8].mxu1 }
 0x2f9   :  { %v969_v22 = vadd.f32 %v1700_v20, %v968_v21  ;;  %v1894_v23 = vpop.f32.mrb[9].mxu1 }
 0x2fa   :  { %v971_v24 = vpop.f32.mrb[10].mxu1 }
 0x2fb   :  { %v972_v25 = vadd.f32 %v1700_v20, %v971_v24  ;;  %v1895_v26 = vpop.f32.mrb[11].mxu1  ;;  %v975_v31 = vmax.f32 %v969_v22, 0.0  ;;  %v1764_v20 = vcombine.low %v1036_v12, %v1040_v13  ;;  %v1044_v22 = vlaneseq }
 0x2fc   :  { %v1042_v26 = vld [vmem:[%s2246_s5 + $0x3] sm:$0xff] }
 0x2fd   :  { %v976_v32 = vmax.f32 %v972_v25, 0.0  ;;  %v1045_v23 = vshrl.u32 %v1044_v22, 7 }
 0x2ff   :  { %v2184_v33 = vpack.c.bf16 %v976_v32, %v975_v31  ;;  %v1046_v24 = vsub.s32 0, %v1045_v23  ;;  %v1054_v25 = vsub.s32 2, %v1045_v23  ;;  %v1050_v27 = vsub.s32 1, %v1045_v23 }
 0x300   :  { %v1058_v28 = vsub.s32 3, %v1045_v23  ;;  %v1074_v60 = vsub.s32 7, %v1045_v23 }
 0x301   :  { %1437 = vmatmul.mubr.bf16.vlgmr.msra.gmra.mrb[12].mxu1 %v2184_v33  ;;  %1480 = vmatmul.mubr.bf16.vlgmr.msra.gmra.mrb[12].mxu0 %v2184_v33  ;;  %v1047_v29 = vrot.slane %v1042_v26, %v1046_v24  ;;  %v1055_v30 = vrot.slane %v1042_v26, %v1054_v25  ;;  %v1051_v31 = vrot.slane %v1042_v26, %v1050_v27 }
 0x302   :  { %1491 = vmatpush1.bf16.msra.mxu1 %v1708_v14  ;;  %1534 = vmatpush1.bf16.msra.mxu0 %v1710_v18  ;;  %v1037_v14 = vld [vmem:[#allocation4 + $0x1d8] sm:$0xff]  ;;  %v1765_v18 = vcombine.high %v1036_v12, %v1040_v13  ;;  %v1059_v32 = vrot.slane %v1042_v26, %v1058_v28 }
 0x303   :  { %1492 = vmatprep.subr.bf16.mxu1 %v1717_v34  ;;  %1535 = vmatprep.subr.bf16.mxu0 %v1719_v35  ;;  %v1767_v19 = vcombine.high %v1037_v14, %v1041_v15  ;;  %v1766_v21 = vcombine.low %v1037_v14, %v1041_v15 }
 0x304   :  { %1522 = vmatprep.mubr.bf16.mxu1 %v2035_v17  ;;  %1565 = vmatprep.mubr.bf16.mxu0 %v2035_v17  ;;  %v1758_v17 = vcombine.low %v1029_v6, %v1033_v7 }
 0x306   :  { %1493 = vmatpush1.bf16.msra.mxu1 %v1716_v40  ;;  %1536 = vmatpush1.bf16.msra.mxu0 %v1718_v41 }
 0x307   :  { %1494 = vmatprep.subr.bf16.mxu1 %v1725_v42  ;;  %1537 = vmatprep.subr.bf16.mxu0 %v1727_v43 }
 0x30a   :  { %1495 = vmatpush1.bf16.msra.mxu1 %v1724_v48  ;;  %1538 = vmatpush1.bf16.msra.mxu0 %v1726_v49 }
 0x30b   :  { %1496 = vmatprep.subr.bf16.mxu1 %v1733_v50  ;;  %1539 = vmatprep.subr.bf16.mxu0 %v1735_v51 }
 0x30e   :  { %1497 = vmatpush1.bf16.msra.mxu1 %v1732_v56  ;;  %1540 = vmatpush1.bf16.msra.mxu0 %v1734_v57  ;;  %v1062_v57 = vsub.s32 4, %v1045_v23 }
 0x30f   :  { %1498 = vmatprep.subr.bf16.mxu1 %v1741_v58  ;;  %1541 = vmatprep.subr.bf16.mxu0 %v1743_v59  ;;  %v1070_v58 = vsub.s32 6, %v1045_v23  ;;  %v1066_v59 = vsub.s32 5, %v1045_v23 }
 0x310   :  { %v1063_v61 = vrot.slane %v1042_v26, %v1062_v57 }
 0x311   :  { %v1071_v62 = vrot.slane %v1042_v26, %v1070_v58  ;;  %v1067_v63 = vrot.slane %v1042_v26, %v1066_v59 }
 0x312   :  { %1499 = vmatpush1.bf16.msra.mxu1 %v1740_v0  ;;  %1542 = vmatpush1.bf16.msra.mxu0 %v1742_v1  ;;  %v1075_v0 = vrot.slane %v1042_v26, %v1074_v60 }
 0x313   :  { %1500 = vmatprep.subr.bf16.mxu1 %v1749_v2  ;;  %1543 = vmatprep.subr.bf16.mxu0 %v1751_v3 }
 0x316   :  { %1501 = vmatpush1.bf16.msra.mxu1 %v1748_v8  ;;  %1544 = vmatpush1.bf16.msra.mxu0 %v1750_v9 }
 0x317   :  { %1502 = vmatprep.subr.bf16.mxu1 %v1757_v10  ;;  %1545 = vmatprep.subr.bf16.mxu0 %v1759_v11 }
 0x31a   :  { %1503 = vmatpush1.bf16.msra.mxu1 %v1756_v16  ;;  %1546 = vmatpush1.bf16.msra.mxu0 %v1758_v17 }
 0x31b   :  { %1504 = vmatprep.subr.bf16.mxu1 %v1765_v18  ;;  %1547 = vmatprep.subr.bf16.mxu0 %v1767_v19 }
 0x31e   :  { %1505 = vmatpush1.bf16.msra.mxu1 %v1764_v20  ;;  %1548 = vmatpush1.bf16.msra.mxu0 %v1766_v21 }
 0x321   :  { %1523 = vmatmul.mubr.bf16.vlgmr.msra.gmra.mrb[16].mxu1 %v2184_v33  ;;  %1566 = vmatmul.mubr.bf16.vlgmr.msra.gmra.mrb[16].mxu0 %v2184_v33 }
 0x3d4   :  { %v1438_v34 = vpop.f32.mrb[12].mxu1  ;;  %v1481_v35 = vpop.f32.mrb[12].mxu0 }
 0x3d5   :  { %v1439_v36 = vadd.f32 %v1438_v34, %v1047_v29  ;;  %v1482_v37 = vadd.f32 %v1481_v35, %v1055_v30  ;;  %v1440_v38 = vpop.f32.mrb[13].mxu1  ;;  %v1483_v33 = vpop.f32.mrb[13].mxu0 }
 0x3d6   :  { %v1441_v39 = vadd.f32 %v1440_v38, %v1051_v31  ;;  %v1484_v40 = vadd.f32 %v1483_v33, %v1059_v32  ;;  %v1442_v41 = vpop.f32.mrb[14].mxu1  ;;  %v1485_v42 = vpop.f32.mrb[14].mxu0 }
 0x3d7   :  { %v1576_v43 = vmax.f32 %v1439_v36, 0.0  ;;  %v1578_v44 = vmax.f32 %v1482_v37, 0.0  ;;  %v1443_v45 = vadd.f32 %v1442_v41, %v1047_v29  ;;  %v1486_v46 = vadd.f32 %v1485_v42, %v1055_v30  ;;  %v1444_v47 = vpop.f32.mrb[15].mxu1  ;;  %v1487_v48 = vpop.f32.mrb[15].mxu0 }
 0x3d8   :  { %v1577_v49 = vmax.f32 %v1441_v39, 0.0  ;;  %v1579_v50 = vmax.f32 %v1484_v40, 0.0  ;;  %v1445_v51 = vadd.f32 %v1444_v47, %v1051_v31  ;;  %v1488_v52 = vadd.f32 %v1487_v48, %v1059_v32 }
 0x3d9   :  { %1592 = vst [vmem:[%s2247_s6] sm:$0xff] %v1576_v43  ;;  %1594 = vst [vmem:[%s2247_s6 + $0x10] sm:$0xff] %v1578_v44  ;;  %v1584_v53 = vmax.f32 %v1443_v45, 0.0  ;;  %v1586_v54 = vmax.f32 %v1486_v46, 0.0 }
 0x3da   :  { %1593 = vst [vmem:[%s2247_s6 + $0x8] sm:$0xff] %v1577_v49  ;;  %1595 = vst [vmem:[%s2247_s6 + $0x18] sm:$0xff] %v1579_v50  ;;  %v1585_v55 = vmax.f32 %v1445_v51, 0.0  ;;  %v1587_v56 = vmax.f32 %v1488_v52, 0.0 }
 0x3db   :  { %1600 = vst [vmem:[%s2247_s6 + $0x40] sm:$0xff] %v1584_v53  ;;  %1602 = vst [vmem:[%s2247_s6 + $0x50] sm:$0xff] %v1586_v54 }
 0x3dc   :  { %1601 = vst [vmem:[%s2247_s6 + $0x48] sm:$0xff] %v1585_v55  ;;  %1603 = vst [vmem:[%s2247_s6 + $0x58] sm:$0xff] %v1587_v56 }
 0x3f4   :  { %v1524_v1 = vpop.f32.mrb[16].mxu1  ;;  %v1567_v2 = vpop.f32.mrb[16].mxu0 }
 0x3f5   :  { %v1525_v3 = vadd.f32 %v1524_v1, %v1063_v61  ;;  %v1568_v4 = vadd.f32 %v1567_v2, %v1071_v62  ;;  %v1526_v5 = vpop.f32.mrb[17].mxu1  ;;  %v1569_v6 = vpop.f32.mrb[17].mxu0 }
 0x3f6   :  { %v1527_v7 = vadd.f32 %v1526_v5, %v1067_v63  ;;  %v1570_v8 = vadd.f32 %v1569_v6, %v1075_v0  ;;  %v1528_v9 = vpop.f32.mrb[18].mxu1  ;;  %v1571_v10 = vpop.f32.mrb[18].mxu0 }
 0x3f7   :  { %v1580_v11 = vmax.f32 %v1525_v3, 0.0  ;;  %v1582_v12 = vmax.f32 %v1568_v4, 0.0  ;;  %v1529_v13 = vadd.f32 %v1528_v9, %v1063_v61  ;;  %v1572_v14 = vadd.f32 %v1571_v10, %v1071_v62  ;;  %v1530_v15 = vpop.f32.mrb[19].mxu1  ;;  %v1573_v16 = vpop.f32.mrb[19].mxu0 }
 0x3f8   :  { %v1581_v17 = vmax.f32 %v1527_v7, 0.0  ;;  %v1583_v18 = vmax.f32 %v1570_v8, 0.0  ;;  %v1531_v19 = vadd.f32 %v1530_v15, %v1067_v63  ;;  %v1574_v20 = vadd.f32 %v1573_v16, %v1075_v0 }
 0x3f9   :  { %1596 = vst [vmem:[%s2247_s6 + $0x20] sm:$0xff] %v1580_v11  ;;  %1598 = vst [vmem:[%s2247_s6 + $0x30] sm:$0xff] %v1582_v12  ;;  %v1588_v21 = vmax.f32 %v1529_v13, 0.0  ;;  %v1590_v22 = vmax.f32 %v1572_v14, 0.0 }
 0x3fa   :  { %1597 = vst [vmem:[%s2247_s6 + $0x28] sm:$0xff] %v1581_v17  ;;  %1599 = vst [vmem:[%s2247_s6 + $0x38] sm:$0xff] %v1583_v18  ;;  %v1589_v23 = vmax.f32 %v1531_v19, 0.0  ;;  %v1591_v24 = vmax.f32 %v1574_v20, 0.0 }
 0x3fb   :  { %1604 = vst [vmem:[%s2247_s6 + $0x60] sm:$0xff] %v1588_v21  ;;  %1606 = vst [vmem:[%s2247_s6 + $0x70] sm:$0xff] %v1590_v22 }
 0x3fc   :  { %1605 = vst [vmem:[%s2247_s6 + $0x68] sm:$0xff] %v1589_v23  ;;  %1607 = vst [vmem:[%s2247_s6 + $0x78] sm:$0xff] %v1591_v24 }
 0x3fd   :  { %1616 = vsyncpa [#allocation3], 1 }
 0x3fe   :  { %1617 = vsyncpa [#allocation5], 1 }

</bundles_post_ra>
